<compile_context>
chip_gen: v6e
topology: v6e:2x2x1
jax: 0.10.0
libtpu: 0.0.40
codegen_flags: <defaults>
</compile_context>

<pallas_src>
import functools

import jax
import jax.numpy as jnp
from jax.experimental import pallas as pl
from jax.experimental.pallas import tpu as pltpu

# Model hyper-parameters (small, consistent with the module's semantics).
NUM_HEADS = 4                         # layer_num_heads
HEAD_DIM = 8                          # hidden_size (per-head GATConv output)
LAST_HIDDEN = NUM_HEADS * HEAD_DIM    # hidden_size * num_heads = 32
IN_SIZE = 16                          # in_size (synthetic 'han' feature size)
OUT_SIZE = 2                          # classifier output size
NEG_INF = -1e30


def _elu(x):
    # F.elu: x > 0 -> x ; else exp(x) - 1 (clamp arg so the dead branch stays finite)
    return jnp.where(x > 0, x, jnp.exp(jnp.minimum(x, 0.0)) - 1.0)


def _gat_all_heads(h, adj_bias, w, alr_bd, bias):
    """DGL GATConv (allow_zero_in_degree=True) + ELU, all heads in one pass.

    h:        (N, F)      node features (VMEM value)
    adj_bias: (N, N)      additive mask, 0 where edge dst<-src exists, -1e30 otherwise
    w:        (F, H*D)    fc weight
    alr_bd:   (H*D, 2H)   [block-diag attn_l | block-diag attn_r]
    bias:     (1, H*D)
    returns   (N, H*D)    == GATConv(...).flatten(1), one lane-dense value
    """
    n = h.shape[0]
    # Single projection for all heads.
    feat = jnp.dot(h, w, preferred_element_type=jnp.float32)               # (N, H*D)

    # Both score sides for all heads in ONE MXU push, head-major result:
    #   scores[h, n]   = <feat_n(head h), attn_l_h>   for h in [0, H)
    #   scores[H+h, n] = <feat_n(head h), attn_r_h>
    scores = jax.lax.dot_general(alr_bd, feat, (((0,), (1,)), ((), ())),
                                 preferred_element_type=jnp.float32)        # (2H, N)
    el_t = scores[:NUM_HEADS, :]                                            # (H, N) [h, src]
    er_t = scores[NUM_HEADS:, :]                                            # (H, N) [h, dst]

    # Edge logits for all heads with a SINGLE head-major broadcast (no per-head
    # slice/stack relayouts): e[h, dst, src] = er_t[h, dst] + el_t[h, src].
    e = er_t[:, :, None] + el_t[:, None, :]                                 # (H, N, N)
    # LeakyReLU(0.2) as one max; adjacency as a precomputed additive mask.
    e = jnp.maximum(e, 0.2 * e) + adj_bias[None, :, :]

    # Masked edge-softmax over incoming edges.  Clamping the row max at 0 keeps
    # fully masked rows (zero in-degree / padding) at exp(-1e30) == 0 so den == 0
    # -> alpha == 0, while valid rows are unchanged (softmax shift invariance).
    mrow = jnp.maximum(jnp.max(e, axis=-1, keepdims=True), 0.0)
    p = jnp.exp(e - mrow)
    den = jnp.sum(p, axis=-1, keepdims=True)
    inv = pl.reciprocal(jnp.where(den > 0, den, 1.0), approx=True)          # EUP slot
    alpha = p * inv                                                          # (H, N, N)

    # Aggregation: one reshape + leading-axis transpose (einshape-equivalent), one
    # batched MXU contraction, transpose back to the lane-dense (N, H*D) layout.
    # (At production N, cast alpha/feat to bf16 here for v5e's bf16-only MXU.)
    feat_hnd = jnp.swapaxes(feat.reshape(n, NUM_HEADS, HEAD_DIM), 0, 1)      # (H, N, D)
    ctx = jnp.einsum('hij,hjd->hid', alpha, feat_hnd,
                     preferred_element_type=jnp.float32)                     # (H, N, D)
    rst = jnp.swapaxes(ctx, 0, 1).reshape(n, LAST_HIDDEN)                    # (N, H*D)

    return _elu(rst + bias)


def fused_forward_kernel(type_ref, feats_ref, adjb_ref, w_ref, alr_ref, b_ref,
                         wc_ref, bc_ref, out_ref, acc_ref,
                         *, type_counts, type_npaths):
    """One grid step == one single-metapath HANLayer (GATConv; SemanticAttention
    over a single metapath is the identity).  Per-node-type embeddings accumulate
    in a VMEM scratch; the last step averages over metapaths per type
    (get_assemble_node_features), scatters into the contiguous global node table
    and applies the classifier — all without leaving VMEM."""
    m = pl.program_id(0)

    @pl.when(m == 0)
    def _init():
        acc_ref[...] = jnp.zeros_like(acc_ref)

    gat = _gat_all_heads(feats_ref[0], adjb_ref[0], w_ref[0], alr_ref[0], b_ref[0])
    t = type_ref[m]                         # root node-type of this metapath (SMEM)
    acc_ref[t] = acc_ref[t] + gat           # dynamic first-axis accumulate

    @pl.when(m == pl.num_programs(0) - 1)
    def _finalize():
        pieces = []
        for tt, n_t in enumerate(type_counts):
            scale = (1.0 / type_npaths[tt]) if type_npaths[tt] else 0.0
            # drop padded rows, average over the metapaths rooted at this type
            pieces.append(acc_ref[tt][:n_t, :] * scale)
        hiddens = jnp.concatenate(pieces, axis=0)       # (total_nodes, H*D)
        out_ref[...] = (jnp.dot(hiddens, wc_ref[...],
                                preferred_element_type=jnp.float32) + bc_ref[...])


def mando_forward(type_tbl, feats_stk, adjb_stk, w_stk, alr_stk, b_stk, w_cls, b_cls,
                  *, type_counts, type_npaths):
    num_mp, n_pad, fin = feats_stk.shape
    hd = w_stk.shape[2]
    total = sum(type_counts)
    num_types = len(type_counts)
    kernel = functools.partial(fused_forward_kernel,
                               type_counts=tuple(type_counts),
                               type_npaths=tuple(type_npaths))
    grid_spec = pltpu.PrefetchScalarGridSpec(
        num_scalar_prefetch=1,                       # metapath -> root-type table (SMEM)
        grid=(num_mp,),                              # metapath axis = pipeline stage
        in_specs=[
            pl.BlockSpec((1, n_pad, fin), lambda m, tt: (m, 0, 0)),       # node feats
            pl.BlockSpec((1, n_pad, n_pad), lambda m, tt: (m, 0, 0)),     # additive adj mask
            pl.BlockSpec((1, fin, hd), lambda m, tt: (m, 0, 0)),          # GAT fc weight
            pl.BlockSpec((1, hd, 2 * NUM_HEADS), lambda m, tt: (m, 0, 0)),# [attn_l|attn_r] bd
            pl.BlockSpec((1, 1, hd), lambda m, tt: (m, 0, 0)),            # GAT bias
            pl.BlockSpec((hd, OUT_SIZE), lambda m, tt: (0, 0)),           # classifier weight
            pl.BlockSpec((1, OUT_SIZE), lambda m, tt: (0, 0)),            # classifier bias
        ],
        out_specs=pl.BlockSpec((total, OUT_SIZE), lambda m, tt: (0, 0)),
        scratch_shapes=[pltpu.VMEM((num_types, n_pad, LAST_HIDDEN), jnp.float32)],
    )
    # Accumulator across the metapath axis -> "arbitrary".  At production graph
    # sizes: flash-tile the (H,N,N) softmax on an extra kv grid axis, raise
    # vmem_limit_bytes explicitly (size for v7x's 64 MiB VMEM first), stream the
    # adjacency mask in bf16/int8, and batch several graphs along the sublanes.
    return pl.pallas_call(
        kernel,
        out_shape=jax.ShapeDtypeStruct((total, OUT_SIZE), jnp.float32),
        grid_spec=grid_spec,
        compiler_params=pltpu.CompilerParams(dimension_semantics=("arbitrary",)),
    )(type_tbl, feats_stk, adjb_stk, w_stk, alr_stk, b_stk, w_cls, b_cls)


# ------------------------- pure-JAX reference (unpadded) ------------------------- #
def reference_forward(feats_by_type, adjs, params, w_cls, b_cls,
                      metapath_types, type_counts):
    """Straightforward per-head reference mirroring the PyTorch module."""
    def gat_ref(h, adj, p):
        feat = h @ p["w"]
        outs = []
        for hh in range(NUM_HEADS):
            sl = slice(hh * HEAD_DIM, (hh + 1) * HEAD_DIM)
            fh = feat[:, sl]
            el = fh @ p["attn_l"][hh]
            er = fh @ p["attn_r"][hh]
            e = er[:, None] + el[None, :]
            e = jnp.where(e >= 0, e, 0.2 * e)
            e = jnp.where(adj > 0, e, NEG_INF)
            ex = jnp.exp(e - jnp.max(e, axis=1, keepdims=True)) * adj
            den = jnp.sum(ex, axis=1, keepdims=True)
            alpha = ex / jnp.where(den > 0, den, 1.0)
            outs.append(jax.nn.elu(alpha @ fh + p["bias"][:, sl]))
        return jnp.concatenate(outs, axis=1)

    # SemanticAttention over a single metapath is the identity (beta == 1).
    per_type = {}
    for m, t in enumerate(metapath_types):
        per_type.setdefault(t, []).append(gat_ref(feats_by_type[t], adjs[m], params[m]))
    pieces = []
    for t in range(len(type_counts)):
        embs = per_type.get(t)
        pieces.append(jnp.zeros((type_counts[t], LAST_HIDDEN), jnp.float32)
                      if embs is None else sum(embs) / float(len(embs)))
    hiddens = jnp.concatenate(pieces, axis=0)
    return hiddens @ w_cls + b_cls


# ------------------------------------- main -------------------------------------- #
if __name__ == "__main__":
    key = jax.random.PRNGKey(0)
    keys = iter(jax.random.split(key, 16))

    # Synthetic heterograph: 2 node types (A: 16 nodes, B: 8 nodes) occupying
    # contiguous global-id ranges [0,16) and [16,24); 3 length-2 metapaths (two
    # rooted at A, one at B), i.e. one single-metapath HANLayer each, as in
    # self.layers.
    # TODO(synk): the DGL graph preprocessing (heterograph construction,
    # metapath_reachable_graph, node_ids_dict bookkeeping) is host-side Python and is
    # represented here by synthetic dense adjacencies + contiguous per-type id ranges.
    n_a, n_b = 16, 8
    n_pad = 16                        # pad type-B inputs to a common stacked node count
    total_nodes = n_a + n_b
    metapath_types = (0, 0, 1)        # root node type of each metapath (0 = A, 1 = B)
    type_counts = (n_a, n_b)
    type_npaths = tuple(metapath_types.count(t) for t in range(len(type_counts)))

    feats_by_type = [
        jax.random.normal(next(keys), (n_a, IN_SIZE), jnp.float32),
        jax.random.normal(next(keys), (n_b, IN_SIZE), jnp.float32),
    ]
    adjs = []
    for t in metapath_types:
        n = type_counts[t]
        adjs.append(jax.random.bernoulli(next(keys), 0.3, (n, n)).astype(jnp.float32))

    def init_gat_params(k):
        ks = jax.random.split(k, 4)
        return dict(
            w=0.2 * jax.random.normal(ks[0], (IN_SIZE, LAST_HIDDEN), jnp.float32),
            attn_l=0.2 * jax.random.normal(ks[1], (NUM_HEADS, HEAD_DIM), jnp.float32),
            attn_r=0.2 * jax.random.normal(ks[2], (NUM_HEADS, HEAD_DIM), jnp.float32),
            bias=0.1 * jax.random.normal(ks[3], (1, LAST_HIDDEN), jnp.float32),
        )

    gat_params = [init_gat_params(next(keys)) for _ in metapath_types]
    w_cls = 0.2 * jax.random.normal(next(keys), (LAST_HIDDEN, OUT_SIZE), jnp.float32)
    b_cls = jnp.zeros((1, OUT_SIZE), jnp.float32)

    # ---- pack & pad everything for the fused kernel (host-side glue) ----
    def block_diag_attn(a):           # (H, D) -> (H*D, H): bd[h*D+d, h] = a[h, d]
        eye = jnp.eye(NUM_HEADS, dtype=a.dtype)
        return (a[:, :, None] * eye[:, None, :]).reshape(NUM_HEADS * HEAD_DIM, NUM_HEADS)

    def pad_rows(x):
        return jnp.pad(x, ((0, n_pad - x.shape[0]), (0, 0)))

    def pad_adj(a):
        return jnp.pad(a, ((0, n_pad - a.shape[0]), (0, n_pad - a.shape[1])))

    feats_stk = jnp.stack([pad_rows(feats_by_type[t]) for t in metapath_types])   # (3,16,16)
    # additive adjacency mask: 0 where an edge exists, -1e30 otherwise (padded rows
    # have zero in-degree -> alpha == 0 and are dropped before the per-type average)
    adjb_stk = jnp.stack([jnp.where(pad_adj(a) > 0, 0.0, NEG_INF).astype(jnp.float32)
                          for a in adjs])                                          # (3,16,16)
    w_stk = jnp.stack([p["w"] for p in gat_params])                                # (3,16,32)
    alr_stk = jnp.stack([jnp.concatenate([block_diag_attn(p["attn_l"]),
                                          block_diag_attn(p["attn_r"])], axis=1)
                         for p in gat_params])                                     # (3,32,8)
    b_stk = jnp.stack([p["bias"] for p in gat_params])                             # (3,1,32)
    type_tbl = jnp.array(metapath_types, dtype=jnp.int32)                          # (3,)

    logits = mando_forward(type_tbl, feats_stk, adjb_stk, w_stk, alr_stk, b_stk,
                           w_cls, b_cls,
                           type_counts=type_counts, type_npaths=type_npaths)
    jax.block_until_ready(logits)

    # Correctness against an independent plain-JAX (unpadded, per-head) reference.
    ref = reference_forward(feats_by_type, adjs, gat_params, w_cls, b_cls,
                            metapath_types, type_counts)
    assert logits.shape == (total_nodes, OUT_SIZE)
    assert bool(jnp.all(jnp.isfinite(logits)))
    err = float(jnp.max(jnp.abs(logits - ref)))
    # 5e-3 budget: default-precision MXU passes + pl.reciprocal(approx=True) on the
    # softmax denominator (per the review, re-checked against the reference).
    assert err < 5e-3, f"kernel/reference mismatch: max abs err = {err}"
    print("KERNEL_OK")
</pallas_src>

<mosaic_0001>
module attributes {stable_mosaic.version = 11 : i64} {
  func.func @fused_forward_kernel(%arg0: i32, %arg1: memref<3xi32, #tpu.memory_space<smem>>, %arg2: memref<1x16x16xf32, #tpu.memory_space<vmem>>, %arg3: memref<1x16x16xf32, #tpu.memory_space<vmem>>, %arg4: memref<1x16x32xf32, #tpu.memory_space<vmem>>, %arg5: memref<1x32x8xf32, #tpu.memory_space<vmem>>, %arg6: memref<1x1x32xf32, #tpu.memory_space<vmem>>, %arg7: memref<32x2xf32, #tpu.memory_space<vmem>>, %arg8: memref<1x2xf32, #tpu.memory_space<vmem>>, %arg9: memref<24x2xf32, #tpu.memory_space<vmem>>, %arg10: memref<2x16x32xf32, #tpu.memory_space<vmem>>) attributes {dimension_semantics = [#tpu.dimension_semantics<arbitrary>], iteration_bounds = array<i64: 3>, scalar_prefetch = 1 : i64, scratch_operands = 1 : i64, tpu.core_type = #tpu.core_type<tc>, window_params = [{transform_indices = @transform_0, window_bounds = array<i64: 1, 16, 16>}, {transform_indices = @transform_1, window_bounds = array<i64: 1, 16, 16>}, {transform_indices = @transform_2, window_bounds = array<i64: 1, 16, 32>}, {transform_indices = @transform_3, window_bounds = array<i64: 1, 32, 8>}, {transform_indices = @transform_4, window_bounds = array<i64: 1, 1, 32>}, {pipeline_mode = #tpu.pipeline_mode<synchronous>, transform_indices = @transform_5, window_bounds = array<i64: 32, 2>}, {pipeline_mode = #tpu.pipeline_mode<synchronous>, transform_indices = @transform_6, window_bounds = array<i64: 1, 2>}, {pipeline_mode = #tpu.pipeline_mode<synchronous>, transform_indices = @transform_7, window_bounds = array<i64: 24, 2>}]} {
    %c0_i32 = arith.constant 0 : i32
    %0 = arith.cmpi eq, %arg0, %c0_i32 : i32
    %1 = arith.extui %0 : i1 to i32
    %c0_i32_0 = arith.constant 0 : i32
    %2 = arith.cmpi ne, %1, %c0_i32_0 : i32
    scf.if %2 {
      %cst_31 = arith.constant 0.000000e+00 : f32
      %72 = vector.broadcast %cst_31 : f32 to vector<2x16x32xf32>
      %c0_32 = arith.constant 0 : index
      %c0_33 = arith.constant 0 : index
      %c0_34 = arith.constant 0 : index
      %73 = vector.load %arg10[%c0_32, %c0_33, %c0_34] : memref<2x16x32xf32, #tpu.memory_space<vmem>>, vector<2x16x32xf32>
      tpu.vector_store %arg10[%c0_32, %c0_33, %c0_34], %72 {strides = array<i32>} : memref<2x16x32xf32, #tpu.memory_space<vmem>>, vector<2x16x32xf32>,
    } else {
    }
    %c0 = arith.constant 0 : index
    %c0_1 = arith.constant 0 : index
    %c0_2 = arith.constant 0 : index
    %3 = vector.load %arg2[%c0, %c0_1, %c0_2] : memref<1x16x16xf32, #tpu.memory_space<vmem>>, vector<1x16x16xf32>
    %4 = vector.shape_cast %3 : vector<1x16x16xf32> to vector<16x16xf32>
    %c0_3 = arith.constant 0 : index
    %c0_4 = arith.constant 0 : index
    %c0_5 = arith.constant 0 : index
    %5 = vector.load %arg3[%c0_3, %c0_4, %c0_5] : memref<1x16x16xf32, #tpu.memory_space<vmem>>, vector<1x16x16xf32>
    %6 = vector.shape_cast %5 : vector<1x16x16xf32> to vector<16x16xf32>
    %c0_6 = arith.constant 0 : index
    %c0_7 = arith.constant 0 : index
    %c0_8 = arith.constant 0 : index
    %7 = vector.load %arg4[%c0_6, %c0_7, %c0_8] : memref<1x16x32xf32, #tpu.memory_space<vmem>>, vector<1x16x32xf32>
    %8 = vector.shape_cast %7 : vector<1x16x32xf32> to vector<16x32xf32>
    %c0_9 = arith.constant 0 : index
    %c0_10 = arith.constant 0 : index
    %c0_11 = arith.constant 0 : index
    %9 = vector.load %arg5[%c0_9, %c0_10, %c0_11] : memref<1x32x8xf32, #tpu.memory_space<vmem>>, vector<1x32x8xf32>
    %10 = vector.shape_cast %9 : vector<1x32x8xf32> to vector<32x8xf32>
    %c0_12 = arith.constant 0 : index
    %c0_13 = arith.constant 0 : index
    %c0_14 = arith.constant 0 : index
    %11 = vector.load %arg6[%c0_12, %c0_13, %c0_14] : memref<1x1x32xf32, #tpu.memory_space<vmem>>, vector<1x1x32xf32>
    %12 = vector.shape_cast %11 : vector<1x1x32xf32> to vector<1x32xf32>
    %cst = arith.constant dense<0.000000e+00> : vector<16x32xf32>
    %13 = tpu.matmul %4, %8, %cst {dimension_numbers = #tpu.dot_dimension_numbers<[1], [0], [0], [1], [0, 0, 1, 1], [], []>} : vector<16x16xf32>, vector<16x32xf32>, vector<16x32xf32> -> vector<16x32xf32>
    %cst_15 = arith.constant dense<0.000000e+00> : vector<8x16xf32>
    %14 = tpu.matmul %10, %13, %cst_15 {dimension_numbers = #tpu.dot_dimension_numbers<[0], [1], [1], [0], [0, 1, 1, 0], [], []>} : vector<32x8xf32>, vector<16x32xf32>, vector<8x16xf32> -> vector<8x16xf32>
    %15 = vector.extract_strided_slice %14 {offsets = [0, 0], sizes = [4, 16], strides = [1, 1]} : vector<8x16xf32> to vector<4x16xf32>
    %16 = vector.extract_strided_slice %14 {offsets = [4, 0], sizes = [4, 16], strides = [1, 1]} : vector<8x16xf32> to vector<4x16xf32>
    %17 = vector.shape_cast %16 : vector<4x16xf32> to vector<4x16x1xf32>
    %18 = vector.shape_cast %15 : vector<4x16xf32> to vector<4x1x16xf32>
    %19 = vector.broadcast %17 : vector<4x16x1xf32> to vector<4x16x16xf32>
    %20 = vector.broadcast %18 : vector<4x1x16xf32> to vector<4x16x16xf32>
    %21 = arith.addf %19, %20 : vector<4x16x16xf32>
    %cst_16 = arith.constant 2.000000e-01 : f32
    %22 = vector.broadcast %cst_16 : f32 to vector<4x16x16xf32>
    %23 = arith.mulf %22, %21 : vector<4x16x16xf32>
    %24 = arith.maximumf %21, %23 : vector<4x16x16xf32>
    %25 = vector.shape_cast %6 : vector<16x16xf32> to vector<1x16x16xf32>
    %26 = vector.broadcast %25 : vector<1x16x16xf32> to vector<4x16x16xf32>
    %27 = arith.addf %24, %26 : vector<4x16x16xf32>
    %cst_17 = arith.constant dense<0xFF800000> : vector<4x16xf32>
    %28 = vector.multi_reduction <maximumf>, %27, %cst_17 [2] : vector<4x16x16xf32> to vector<4x16xf32>
    %29 = vector.shape_cast %28 : vector<4x16xf32> to vector<4x16x1xf32>
    %cst_18 = arith.constant 0.000000e+00 : f32
    %30 = vector.broadcast %cst_18 : f32 to vector<4x16x1xf32>
    %31 = arith.maximumf %29, %30 : vector<4x16x1xf32>
    %32 = vector.broadcast %31 : vector<4x16x1xf32> to vector<4x16x16xf32>
    %33 = arith.subf %27, %32 : vector<4x16x16xf32>
    %34 = math.exp %33 : vector<4x16x16xf32>
    %cst_19 = arith.constant dense<0.000000e+00> : vector<4x16xf32>
    %35 = vector.multi_reduction <add>, %34, %cst_19 [2] : vector<4x16x16xf32> to vector<4x16xf32>
    %36 = vector.shape_cast %35 : vector<4x16xf32> to vector<4x16x1xf32>
    %cst_20 = arith.constant 0.000000e+00 : f32
    %37 = vector.broadcast %cst_20 : f32 to vector<4x16x1xf32>
    %38 = arith.cmpf ogt, %36, %37 : vector<4x16x1xf32>
    %cst_21 = arith.constant 1.000000e+00 : f32
    %39 = vector.broadcast %cst_21 : f32 to vector<4x16x1xf32>
    %40 = arith.select %38, %36, %39 : vector<4x16x1xi1>, vector<4x16x1xf32>
    %41 = tpu.reciprocal %40 {approx = true} : vector<4x16x1xf32> -> vector<4x16x1xf32>
    %42 = vector.broadcast %41 : vector<4x16x1xf32> to vector<4x16x16xf32>
    %43 = arith.mulf %34, %42 : vector<4x16x16xf32>
    %44 = vector.shape_cast %13 : vector<16x32xf32> to vector<16x4x8xf32>
    %45 = tpu.transpose %44, [1, 0, 2] : vector<16x4x8xf32> -> vector<4x16x8xf32>
    "tpu.trace_start"() <{level = 10 : i32, message = "hij,hjd->hid"}> : () -> ()
    %cst_22 = arith.constant dense<0.000000e+00> : vector<4x16x8xf32>
    %46 = tpu.matmul %43, %45, %cst_22 {dimension_numbers = #tpu.dot_dimension_numbers<[2], [1], [1], [2], [0, 0, 0, 1, 1, 2], [0], [0]>} : vector<4x16x16xf32>, vector<4x16x8xf32>, vector<4x16x8xf32> -> vector<4x16x8xf32>
    "tpu.trace_stop"() : () -> ()
    %47 = tpu.transpose %46, [1, 0, 2] : vector<4x16x8xf32> -> vector<16x4x8xf32>
    %48 = vector.shape_cast %47 : vector<16x4x8xf32> to vector<16x32xf32>
    %49 = vector.broadcast %12 : vector<1x32xf32> to vector<16x32xf32>
    %50 = arith.addf %48, %49 : vector<16x32xf32>
    %cst_23 = arith.constant 0.000000e+00 : f32
    %51 = vector.broadcast %cst_23 : f32 to vector<16x32xf32>
    %52 = arith.cmpf ogt, %50, %51 : vector<16x32xf32>
    %cst_24 = arith.constant 0.000000e+00 : f32
    %53 = vector.broadcast %cst_24 : f32 to vector<16x32xf32>
    %54 = arith.minimumf %50, %53 : vector<16x32xf32>
    %55 = math.exp %54 : vector<16x32xf32>
    %cst_25 = arith.constant 1.000000e+00 : f32
    %56 = vector.broadcast %cst_25 : f32 to vector<16x32xf32>
    %57 = arith.subf %55, %56 : vector<16x32xf32>
    %58 = arith.select %52, %50, %57 : vector<16x32xi1>, vector<16x32xf32>
    %59 = arith.index_cast %arg0 : i32 to index
    %60 = memref.load %arg1[%59] : memref<3xi32, #tpu.memory_space<smem>>
    %61 = arith.index_cast %60 : i32 to index
    %c0_26 = arith.constant 0 : index
    %c0_27 = arith.constant 0 : index
    %62 = vector.load %arg10[%61, %c0_26, %c0_27] : memref<2x16x32xf32, #tpu.memory_space<vmem>>, vector<1x16x32xf32>
    %63 = vector.shape_cast %62 : vector<1x16x32xf32> to vector<16x32xf32>
    %64 = arith.addf %63, %58 : vector<16x32xf32>
    %65 = arith.index_cast %60 : i32 to index
    %c0_28 = arith.constant 0 : index
    %c0_29 = arith.constant 0 : index
    %66 = vector.load %arg10[%65, %c0_28, %c0_29] : memref<2x16x32xf32, #tpu.memory_space<vmem>>, vector<1x16x32xf32>
    %67 = vector.shape_cast %66 : vector<1x16x32xf32> to vector<16x32xf32>
    %68 = vector.shape_cast %64 : vector<16x32xf32> to vector<1x16x32xf32>
    tpu.vector_store %arg10[%65, %c0_28, %c0_29], %68 {strides = array<i32>} : memref<2x16x32xf32, #tpu.memory_space<vmem>>, vector<1x16x32xf32>,
    %c2_i32 = arith.constant 2 : i32
    %69 = arith.cmpi eq, %arg0, %c2_i32 : i32
    %70 = arith.extui %69 : i1 to i32
    %c0_i32_30 = arith.constant 0 : i32
    %71 = arith.cmpi ne, %70, %c0_i32_30 : i32
    scf.if %71 {
      %c0_31 = arith.constant 0 : index
      %c0_32 = arith.constant 0 : index
      %c0_33 = arith.constant 0 : index
      %72 = vector.load %arg10[%c0_31, %c0_32, %c0_33] : memref<2x16x32xf32, #tpu.memory_space<vmem>>, vector<1x16x32xf32>
      %73 = vector.shape_cast %72 : vector<1x16x32xf32> to vector<16x32xf32>
      %cst_34 = arith.constant 5.000000e-01 : f32
      %74 = vector.broadcast %cst_34 : f32 to vector<16x32xf32>
      %75 = arith.mulf %73, %74 : vector<16x32xf32>
      %c1 = arith.constant 1 : index
      %c0_35 = arith.constant 0 : index
      %c0_36 = arith.constant 0 : index
      %76 = vector.load %arg10[%c1, %c0_35, %c0_36] : memref<2x16x32xf32, #tpu.memory_space<vmem>>, vector<1x16x32xf32>
      %77 = vector.shape_cast %76 : vector<1x16x32xf32> to vector<16x32xf32>
      %78 = vector.extract_strided_slice %77 {offsets = [0, 0], sizes = [8, 32], strides = [1, 1]} : vector<16x32xf32> to vector<8x32xf32>
      %cst_37 = arith.constant 1.000000e+00 : f32
      %79 = vector.broadcast %cst_37 : f32 to vector<8x32xf32>
      %80 = arith.mulf %78, %79 : vector<8x32xf32>
      %81 = tpu.concatenate %75, %80 in 0 : vector<16x32xf32>, vector<8x32xf32> -> vector<24x32xf32>
      %c0_38 = arith.constant 0 : index
      %c0_39 = arith.constant 0 : index
      %82 = vector.load %arg7[%c0_38, %c0_39] : memref<32x2xf32, #tpu.memory_space<vmem>>, vector<32x2xf32>
      %cst_40 = arith.constant dense<0.000000e+00> : vector<24x2xf32>
      %83 = tpu.matmul %81, %82, %cst_40 {dimension_numbers = #tpu.dot_dimension_numbers<[1], [0], [0], [1], [0, 0, 1, 1], [], []>} : vector<24x32xf32>, vector<32x2xf32>, vector<24x2xf32> -> vector<24x2xf32>
      %c0_41 = arith.constant 0 : index
      %c0_42 = arith.constant 0 : index
      %84 = vector.load %arg8[%c0_41, %c0_42] : memref<1x2xf32, #tpu.memory_space<vmem>>, vector<1x2xf32>
      %85 = vector.broadcast %84 : vector<1x2xf32> to vector<24x2xf32>
      %86 = arith.addf %83, %85 : vector<24x2xf32>
      %c0_43 = arith.constant 0 : index
      %c0_44 = arith.constant 0 : index
      %87 = vector.load %arg9[%c0_43, %c0_44] : memref<24x2xf32, #tpu.memory_space<vmem>>, vector<24x2xf32>
      tpu.vector_store %arg9[%c0_43, %c0_44], %86 {strides = array<i32>} : memref<24x2xf32, #tpu.memory_space<vmem>>, vector<24x2xf32>,
    } else {
    }
    return
  }
  func.func @transform_0(%arg0: i32, %arg1: memref<3xi32, #tpu.memory_space<smem>>) -> (i32, i32, i32) {
    %c0_i32 = arith.constant 0 : i32
    %c0_i32_0 = arith.constant 0 : i32
    %c0_i32_1 = arith.constant 0 : i32
    return %arg0, %c0_i32, %c0_i32_0 : i32, i32, i32
  }
  func.func @transform_1(%arg0: i32, %arg1: memref<3xi32, #tpu.memory_space<smem>>) -> (i32, i32, i32) {
    %c0_i32 = arith.constant 0 : i32
    %c0_i32_0 = arith.constant 0 : i32
    %c0_i32_1 = arith.constant 0 : i32
    return %arg0, %c0_i32, %c0_i32_0 : i32, i32, i32
  }
  func.func @transform_2(%arg0: i32, %arg1: memref<3xi32, #tpu.memory_space<smem>>) -> (i32, i32, i32) {
    %c0_i32 = arith.constant 0 : i32
    %c0_i32_0 = arith.constant 0 : i32
    %c0_i32_1 = arith.constant 0 : i32
    return %arg0, %c0_i32, %c0_i32_0 : i32, i32, i32
  }
  func.func @transform_3(%arg0: i32, %arg1: memref<3xi32, #tpu.memory_space<smem>>) -> (i32, i32, i32) {
    %c0_i32 = arith.constant 0 : i32
    %c0_i32_0 = arith.constant 0 : i32
    %c0_i32_1 = arith.constant 0 : i32
    return %arg0, %c0_i32, %c0_i32_0 : i32, i32, i32
  }
  func.func @transform_4(%arg0: i32, %arg1: memref<3xi32, #tpu.memory_space<smem>>) -> (i32, i32, i32) {
    %c0_i32 = arith.constant 0 : i32
    %c0_i32_0 = arith.constant 0 : i32
    %c0_i32_1 = arith.constant 0 : i32
    return %arg0, %c0_i32, %c0_i32_0 : i32, i32, i32
  }
  func.func @transform_5(%arg0: i32, %arg1: memref<3xi32, #tpu.memory_space<smem>>) -> (i32, i32) {
    %c0_i32 = arith.constant 0 : i32
    %c0_i32_0 = arith.constant 0 : i32
    %c0_i32_1 = arith.constant 0 : i32
    return %c0_i32, %c0_i32_0 : i32, i32
  }
  func.func @transform_6(%arg0: i32, %arg1: memref<3xi32, #tpu.memory_space<smem>>) -> (i32, i32) {
    %c0_i32 = arith.constant 0 : i32
    %c0_i32_0 = arith.constant 0 : i32
    %c0_i32_1 = arith.constant 0 : i32
    return %c0_i32, %c0_i32_0 : i32, i32
  }
  func.func @transform_7(%arg0: i32, %arg1: memref<3xi32, #tpu.memory_space<smem>>) -> (i32, i32) {
    %c0_i32 = arith.constant 0 : i32
    %c0_i32_0 = arith.constant 0 : i32
    %c0_i32_1 = arith.constant 0 : i32
    return %c0_i32, %c0_i32_0 : i32, i32
  }
}

</mosaic_0001>

<bundles_post_ra>
// kernel: tpu_custom_call.1
= control target key start
LH: loop header
LB: loop body
LE: loop exit
PB: predicated region body
PF: predicated region fallthrough
CT: control target
= control target key end

     0   :  { %s2483_s0 = inlined_call_operand.vmem [shape: s32[3], index: 0, kind: input, shape index: {}]   ;;  %s2484_s1 = inlined_call_operand.vmem [shape: f32[3,16,16], index: 1, kind: input, shape index: {}]   ;;  %s2485_s2 = inlined_call_operand.vmem [shape: f32[3,16,16], index: 2, kind: input, shape index: {}]   ;;  %s2486_s3 = inlined_call_operand.vmem [shape: f32[3,16,32], index: 3, kind: input, shape index: {}]   ;;  %s2487_s4 = inlined_call_operand.vmem [shape: f32[3,32,8], index: 4, kind: input, shape index: {}]   ;;  %s2488_s5 = inlined_call_operand.vmem [shape: f32[3,1,32], index: 5, kind: input, shape index: {}]   ;;  %s2489_s6 = inlined_call_operand.vmem [shape: f32[32,2], index: 6, kind: input, shape index: {}]   ;;  %s2490_s7 = inlined_call_operand.vmem [shape: f32[1,2], index: 7, kind: input, shape index: {}]   ;;  %s2491_s8 = inlined_call_operand.vmem [shape: f32[24,2], index: 8, kind: output, shape index: {}]  }
   0x1   :  { %s13_s29 = sshll.u32 %s2483_s0, 4  ;;  %s14_s29 = int_to_ptr.vmem [resolvable:$true] %s13_s29 }
   0x2   :  { %s2133_s30 = scalar_lea.vmem %s14_s29, 16  ;;  %p2138_p1 = scmp.lt.s32.totalorder %s14_s29, %s14_s29 }
   0x3   :  { %p2134_p0 = scmp.ne.s32.totalorder %s14_s29, %s2133_s30  ;;  %p2139_p2 = scmp.lt.s32.totalorder %s2133_s30, %s2133_s30 }
   0x5   :  { %p2140_p3 = por %p2139_p2, %p2138_p1 }
   0x7   :  { %p2141_p4 = pnand %p2140_p3, %p2134_p0 }
   0x9   :  { %2144 = shalt.err (!%p2141_p4)  }
   0xa   :  { %s2155_s9 = smov [#allocation4]  }
   0xb   :  { %16 = dma.vmem_to_smem %s14_s29, 16, %s2155_s9, [#allocation3] }
   0xc   :  { %2149 = dma.done.wait [#allocation3], 16 }
   0xd   :  { %2150 = vsyncadd [#allocation3], 4294967280 }
   0xe   :  { %18 = sfence }
   0xf   :  { %s2218_s10 = smov 0  }
  0x10 LB: > { %s2224_s0 = sadd.s32 4294967295, %s2153_s10   ;;  %p1931_p5 = scmp.ge.s32.totalorder %s2153_s10, 1  ;;  %s2153_s10 = sphi %s2218_s10, %s24_s10  }
  0x11   : > { %p277_p6 = scmp.lt.s32.totalorder %s2153_s10, 4 }
  0x13   : > { %p278_p7 = pnand %p1931_p5, %p277_p6 }
  0x14   : > { %p322_p8 = scmp.lt.s32.totalorder (!%p278_p7), %s2224_s0, 2  ;;  %p1940_p9 = scmp.ne.s32.totalorder (!%p278_p7), %s2224_s0, 0 }
  0x15   : > { %281 = sbr.rel (%p278_p7) target bundleno = 1538 (0x602), region = 48 }
  0x1a   : > { %s2230_s11 = scalar_select %p322_p8, %s2224_s0, 2 }
  0x1b   : > { %348 = sbr.rel (%p1940_p9) target bundleno = 35 (0x23), region = 52 }
  0x1c   : > { %s1973_s12 = sshll.u32 %s2230_s11, 4  ;;  %s1976_s13 = sshll.u32 %s2230_s11, 5 }
  0x1d   : > { %s326_s16 = scalar_lea.vmem %s2484_s1, %s1973_s12  ;;  %s2240_s19 = scalar_lea.vmem %s2485_s2, %s1973_s12 }
  0x1e   : > { %s336_s22 = scalar_lea.vmem %s2486_s3, %s1973_s12  ;;  %s341_s25 = scalar_lea.vmem %s2487_s4, %s1976_s13 }
  0x1f   : > { %s344_s28 = scalar_lea.vmem %s2488_s5, %s2230_s11 }
  0x20   : > { %vm349_vm0 = vcmask 261120   ;;  %v2156_v0 = vmov 0.0  }
  0x21   : > { %350 = vst.msk [vmem:[#allocation2] sm:$0xff] %vm349_vm0, %v2156_v0  ;;  %351 = vst.msk [vmem:[#allocation2 + $0x8] sm:$0xff] %vm349_vm0, %v2156_v0 }
  0x22   : > { %352 = vst.msk [vmem:[#allocation2 + $0x10] sm:$0xff] %vm349_vm0, %v2156_v0  ;;  %353 = vst.msk [vmem:[#allocation2 + $0x18] sm:$0xff] %vm349_vm0, %v2156_v0 }
  0x23 PF: > { %v359_v1 = vld [vmem:[%s336_s22 + $0x8] sm:$0xff]  ;;  %v358_v2 = vld [vmem:[%s336_s22] sm:$0xff]  ;;  %vm365_vm1 = vcmask 130048   ;;  %v362_v7 = vld [vmem:[%s341_s25 + $0x10] sm:$0xff]  ;;  %v2157_v9 = vmov 0.0   ;;  %vm2158_vm2 = vmmov 0   ;;  %v559_v13 = vlaneseq }
  0x24   : > { %v354_v3 = vld [vmem:[%s326_s16] sm:$0xff]  ;;  %2007 = vmatprep.subr.mxu0 %v359_v1  ;;  %v355_v5 = vld [vmem:[%s326_s16 + $0x8] sm:$0xff]  ;;  %v363_v8 = vld [vmem:[%s341_s25 + $0x18] sm:$0xff]  ;;  %2014 = vmatprep.subr.mxu1 %v2157_v9  ;;  %vm479_vm3 = vcmask 261120   ;;  %v2159_v14 = vmov 1966171168  }
  0x25   : > { %2011 = vmatprep.mubr.msk.f32.mxu0 %vm365_vm1, %v354_v3  ;;  %v360_v4 = vld [vmem:[%s341_s25] sm:$0xff]  ;;  %2008 = vmatpush3.msra.mxu0 %v359_v1  ;;  %v361_v6 = vld [vmem:[%s341_s25 + $0x8] sm:$0xff]  ;;  %v605_v15 = vunpack.c.l.s4 %v2159_v14  ;;  %v2264_v16 = vshrl.u32 %v559_v13, 7  ;;  %s2160_s29 = smov 112   ;;  %s2161_s30 = smov 104   ;;  %vm1702_vm12 = vcmask 64512  }
  0x26   : > { %447 = vxpose.xlu0.b32.start [1/4] (short) (narrow) %v360_v4, 8  ;;  %2009 = vmatprep.subr.mxu0 %v358_v2  ;;  %v356_v47 = vld [vmem:[%s2240_s19] sm:$0xff]  ;;  %v357_v55 = vld [vmem:[%s2240_s19 + $0x8] sm:$0xff]  ;;  %s2162_s9 = smov 120   ;;  %s2165_s12 = smov 8   ;;  %vm1707_vm13 = vcmask 195584  }
  0x27   : > { %2010 = vmatpush3.msra.mxu0 %v358_v2  ;;  %2018 = vmatprep.mubr.msk.f32.mxu1 %vm2158_vm2, %v2157_v9  ;;  %v606_v17 = vunpack.c.0.s8 %v605_v15  ;;  %v583_v18 = vsub.s32 6, %v2264_v16  ;;  %v561_v19 = vsub.s32 4, %v2264_v16  ;;  %v630_v26 = vsub.s32 0, %v2264_v16  ;;  %s2166_s13 = smov 16   ;;  %s2167_s14 = smov 24  }
  0x28   : > { %2012 = vmatmul.mubr.msk.f32.vlgmr.msra.gmra.mxu0 %vm365_vm1, %v355_v5  ;;  %v572_v29 = vsub.s32 5, %v2264_v16  ;;  %v594_v38 = vsub.s32 7, %v2264_v16  ;;  %s1730_s17 = sld [smem:[#allocation4 + %s2224_s0]]  ;;  %p1966_p10 = scmp.ne.s32.totalorder %s2224_s0, 2 }
  0x29   : > { %v609_v20 = vsub.s32 %v606_v17, %v2264_v16 }
  0x2a   : > { %448 = vxpose.xlu0.b32.cont [2/4] (short) (narrow) %v361_v6, 8 }
  0x2e   : > { %449 = vxpose.xlu0.b32.cont [3/4] (short) (narrow) %v362_v7, 8  ;;  %s1965_s11 = sshll.u32 %s1730_s17, 4 }
  0x2f   : > { %s1732_s18 = scalar_lea.vmem [#allocation2], %s1965_s11 }
  0x32   : > { %450 = vxpose.xlu0.b32.end [4/4] (short) (narrow) %v363_v8, 8 }
  0xa2   : > { %v463_v12 = vpop.trf.xlu0 }
  0xe8   : > { %v2255_v10 = vpop.f32.mrf.mxu0 }
  0xe9   : > { %2015 = vmatpush3.xpose.msk.msra.mxu1 %vm479_vm3, %v2255_v10 }
  0xea   : > { %2016 = vmatprep.subr.mxu1 %v2157_v9  ;;  %v2259_v11 = vpop.f32.mrf.mxu0 }
  0xed   : > { %2017 = vmatpush3.xpose.msk.msra.mxu1 %vm479_vm3, %v2259_v11 }
  0xf0   : > { %2019 = vmatmul.mubr.msk.f32.vlgmr.msra.gmra.mxu1 %vm479_vm3, %v463_v12 }
 0x1b0   : > { %v555_v21 = vpop.f32.mrf.mxu1 }
 0x1b1   : > { %v584_v22 = vrot.slane %v555_v21, %v583_v18  ;;  %v562_v23 = vrot.slane %v555_v21, %v561_v19  ;;  %v610_v25 = vrot.slane %v555_v21, %v609_v20  ;;  %v573_v36 = vrot.slane %v555_v21, %v572_v29 }
 0x1b2   : > { %v2020_v24 = vpop.f32.mrf.mxu1  ;;  %v595_v39 = vrot.slane %v555_v21, %v594_v38  ;;  %v2163_v29 = vmov 1983009808  }
 0x1b3   : > { %586 = vbcast.lane.b32.xlu0 %v584_v22, 256  ;;  %564 = vbcast.lane.b32.xlu1 %v562_v23, 256  ;;  %v618_v27 = vrot.slane %v610_v25, %v609_v20  ;;  %v611_v28 = vcombine.high %v610_v25, %v610_v25 }
 0x1b5   : > { %v626_v30 = vcombine.high %v618_v27, %v618_v27  ;;  %v631_v31 = vrot.slane %v618_v27, %v630_v26  ;;  %v625_v32 = vrot.slane %v611_v28, %v609_v20 }
 0x1b7   : > { %568 = vbcast.lane.b32.xlu1 %v562_v23, 264  ;;  %v639_v33 = vrot.slane %v626_v30, %v630_v26  ;;  %v635_v34 = vrot.slane %v625_v32, %v630_v26  ;;  %v627_v35 = vcombine.high %v625_v32, %v625_v32  ;;  %v813_v30 = vunpack.c.l.s4 %v2163_v29 }
 0x1b9   : > { %v643_v37 = vrot.slane %v627_v35, %v630_v26 }
 0x1bb   : > { %575 = vbcast.lane.b32.xlu1 %v573_v36, 256 }
 0x1bf   : > { %579 = vbcast.lane.b32.xlu1 %v573_v36, 264 }
 0x1c3   : > { %597 = vbcast.lane.b32.xlu1 %v595_v39, 256 }
 0x1c7   : > { %590 = vbcast.lane.b32.xlu1 %v584_v22, 264 }
 0x1cb   : > { %601 = vbcast.lane.b32.xlu1 %v595_v39, 264 }
 0x225   : > { %v587_v40 = vpop.permute.xlu0 %586  ;;  %v565_v41 = vpop.permute.xlu1 %564 }
 0x226   : > { %v652_v42 = vadd.f32 %v639_v33, %v587_v40  ;;  %v648_v43 = vadd.f32 %v631_v31, %v565_v41 }
 0x228   : > { %v660_v44 = vmul.f32 0.2, %v652_v42  ;;  %v656_v45 = vmul.f32 0.2, %v648_v43 }
 0x229   : > { %v569_v46 = vpop.permute.xlu1 %568 }
 0x22a   : > { %v668_v48 = vmax.f32 %v652_v42, %v660_v44  ;;  %v664_v49 = vmax.f32 %v648_v43, %v656_v45  ;;  %v649_v50 = vadd.f32 %v631_v31, %v569_v46 }
 0x22c   : > { %v657_v51 = vmul.f32 0.2, %v649_v50  ;;  %v672_v52 = vadd.f32 %v664_v49, %v356_v47  ;;  %v2273_v53 = vadd.f32 %v668_v48, %v356_v47 }
 0x22d   : > { %v576_v54 = vpop.permute.xlu1 %575 }
 0x22e   : > { %v665_v56 = vmax.f32 %v649_v50, %v657_v51  ;;  %v680_v57 = vsel %vm365_vm1, %v672_v52, -inf  ;;  %v650_v14 = vadd.f32 %v635_v34, %v576_v54  ;;  %v692_v25 = vsel %vm365_vm1, %v2273_v53, -inf }
 0x22f   : > { %681 = vmax.xlane.f32.xlu1 %v680_v57 }
 0x230   : > { %v673_v58 = vadd.f32 %v665_v56, %v357_v55  ;;  %v658_v15 = vmul.f32 0.2, %v650_v14 }
 0x231   : > { %v580_v59 = vpop.permute.xlu1 %579 }
 0x232   : > { %v683_v60 = vsel %vm365_vm1, %v673_v58, -inf  ;;  %v651_v17 = vadd.f32 %v635_v34, %v580_v59  ;;  %v666_v18 = vmax.f32 %v650_v14, %v658_v15  ;;  %v2164_v34 = vmov 1934713408  }
 0x233   : > { %684 = vmax.xlane.f32.xlu0 %v683_v60  ;;  %v845_v35 = vunpack.c.l.s4 %v2164_v34 }
 0x234   : > { %v659_v19 = vmul.f32 0.2, %v651_v17  ;;  %v2289_v21 = vadd.f32 %v666_v18, %v356_v47 }
 0x235   : > { %v598_v61 = vpop.permute.xlu1 %597  ;;  %v846_v42 = vunpack.c.0.s8 %v845_v35 }
 0x236   : > { %v654_v62 = vadd.f32 %v643_v37, %v598_v61  ;;  %v667_v20 = vmax.f32 %v651_v17, %v659_v19  ;;  %v686_v22 = vsel %vm365_vm1, %v2289_v21, -inf }
 0x237   : > { %v2312_v51 = vsub.s32 %v846_v42, %v2264_v16 }
 0x238   : > { %v662_v63 = vmul.f32 0.2, %v654_v62  ;;  %v2293_v23 = vadd.f32 %v667_v20, %v357_v55 }
 0x239   : > { %v591_v0 = vpop.permute.xlu1 %590 }
 0x23a   : > { %v670_v1 = vmax.f32 %v654_v62, %v662_v63  ;;  %v653_v2 = vadd.f32 %v639_v33, %v591_v0  ;;  %v689_v24 = vsel %vm365_vm1, %v2293_v23, -inf  ;;  %v814_v33 = vunpack.c.0.s8 %v813_v30 }
 0x23c   : > { %v661_v3 = vmul.f32 0.2, %v653_v2  ;;  %v2278_v4 = vadd.f32 %v670_v1, %v356_v47  ;;  %v2307_v41 = vsub.s32 %v814_v33, %v2264_v16 }
 0x23d   : > { %v602_v5 = vpop.permute.xlu1 %601 }
 0x23e   : > { %v669_v6 = vmax.f32 %v653_v2, %v661_v3  ;;  %v655_v7 = vadd.f32 %v643_v37, %v602_v5  ;;  %v698_v26 = vsel %vm365_vm1, %v2278_v4, -inf }
 0x240   : > { %v663_v8 = vmul.f32 0.2, %v655_v7  ;;  %800 = vrot.lane.b32.xlu1 %v2255_v10, %s2160_s29  ;;  %v2282_v9 = vadd.f32 %v669_v6, %v357_v55 }
 0x242   : > { %v671_v12 = vmax.f32 %v655_v7, %v663_v8  ;;  %v695_v27 = vsel %vm365_vm1, %v2282_v9, -inf }
 0x244   : > { %806 = vrot.lane.b32.xlu1 %v2255_v10, %s2161_s30  ;;  %v2286_v13 = vadd.f32 %v671_v12, %v357_v55 }
 0x246   : > { %v701_v28 = vsel %vm365_vm1, %v2286_v13, -inf }
 0x249   : > { %794 = vrot.lane.b32.xlu0 %v2255_v10, %s2162_s9 }
 0x268   : > { %687 = vmax.xlane.f32.xlu1 %v686_v22 }
 0x26c   : > { %690 = vmax.xlane.f32.xlu1 %v689_v24 }
 0x270   : > { %693 = vmax.xlane.f32.xlu1 %v692_v25 }
 0x274   : > { %699 = vmax.xlane.f32.xlu1 %v698_v26 }
 0x278   : > { %696 = vmax.xlane.f32.xlu1 %v695_v27 }
 0x27c   : > { %702 = vmax.xlane.f32.xlu1 %v701_v28 }
 0x28d   : > { %792 = vrot.lane.b32.xlu1 %v2259_v11, %s2162_s9 }
 0x2b8   : > { %v682_v31 = vpop.xlane.xlu1 %681 }
 0x2b9   : > { %v704_v32 = vmax.f32 %v682_v31, 0.0 }
 0x2bb   : > { %v712_v36 = vsub.f32 %v672_v52, %v704_v32 }
 0x2bc   : > { %v685_v37 = vpop.xlane.xlu0 %684  ;;  %v801_v38 = vpop.permute.xlu1 %800 }
 0x2bd   : > { %v720_v39 = vmul.f32 1.442695, %v712_v36  ;;  %v705_v40 = vmax.f32 %v685_v37, 0.0  ;;  %v878_v43 = vcombine.low %v2255_v10, %v801_v38  ;;  %v879_v45 = vcombine.high %v2255_v10, %v801_v38 }
 0x2bf   : > { %2097 = vpow2.f32 %v720_v39  ;;  %v713_v44 = vsub.f32 %v673_v58, %v705_v40  ;;  %v886_v52 = vrot.slane %v878_v43, %v2307_v41  ;;  %v893_v54 = vrot.slane %v879_v45, %v2307_v41 }
 0x2c0   : > { %v795_v46 = vpop.permute.xlu0 %794  ;;  %v807_v47 = vpop.permute.xlu1 %806 }
 0x2c1   : > { %v722_v48 = vmul.f32 1.442695, %v713_v44  ;;  %v894_v49 = vcombine.low %v795_v46, %v807_v47  ;;  %v895_v50 = vcombine.high %v795_v46, %v807_v47 }
 0x2c3   : > { %2099 = vpow2.f32 %v722_v48  ;;  %v902_v55 = vrot.slane %v894_v49, %v2307_v41  ;;  %v909_v56 = vrot.slane %v895_v50, %v2307_v41 }
 0x2c5   : > { %v910_v57 = vcombine.low %v886_v52, %v902_v55  ;;  %v911_v58 = vcombine.high %v886_v52, %v902_v55  ;;  %v926_v10 = vcombine.low %v893_v54, %v909_v56  ;;  %v927_v59 = vcombine.high %v893_v54, %v909_v56 }
 0x2c7   : > { %v918_v60 = vrot.slane %v910_v57, %v2312_v51  ;;  %v925_v61 = vrot.slane %v911_v58, %v2312_v51  ;;  %v934_v16 = vrot.slane %v926_v10, %v2312_v51  ;;  %v941_v62 = vrot.slane %v927_v59, %v2312_v51 }
 0x2c9   : > { %v1014_v63 = vcombine.low %v918_v60, %v925_v61  ;;  %v1948_v0 = vcombine.high %v918_v60, %v925_v61  ;;  %v1030_v1 = vcombine.low %v934_v16, %v941_v62  ;;  %v1949_v2 = vcombine.high %v934_v16, %v941_v62 }
 0x2cb   : > { %v1021_v3 = vrot.slane %v1014_v63, %v2307_v41  ;;  %v1029_v5 = vrot.slane %v1948_v0, %v2307_v41  ;;  %v1037_v6 = vrot.slane %v1030_v1, %v2307_v41  ;;  %v1045_v7 = vrot.slane %v1949_v2, %v2307_v41 }
 0x2cc   : > { %v2326_v8 = vpop.eup %2097 }
 0x2cd   : > { %v736_v12 = vsel %vm365_vm1, %v2326_v8, 0.0  ;;  %v1046_v14 = vcombine.low %v1021_v3, %v1029_v5  ;;  %v1062_v15 = vcombine.low %v1037_v6, %v1045_v7  ;;  %v1047_v17 = vcombine.high %v1021_v3, %v1029_v5 }
 0x2ce   : > { %737 = vadd.xlane.f32.xlu0 %v736_v12  ;;  %v1063_v18 = vcombine.high %v1037_v6, %v1045_v7 }
 0x2cf   : > { %v1054_v19 = vrot.slane %v1046_v14, %v2312_v51  ;;  %v1070_v20 = vrot.slane %v1062_v15, %v2312_v51  ;;  %v1061_v22 = vrot.slane %v1047_v17, %v2312_v51 }
 0x2d0   : > { %v2333_v24 = vpop.eup %2099  ;;  %v1077_v25 = vrot.slane %v1063_v18, %v2312_v51 }
 0x2d1   : > { %v739_v26 = vsel %vm365_vm1, %v2333_v24, 0.0  ;;  %v1078_v27 = vcombine.low %v1054_v19, %v1070_v20  ;;  %v2338_v28 = vcombine.high %v1054_v19, %v1070_v20 }
 0x2d2   : > { %740 = vadd.xlane.f32.xlu1 %v739_v26  ;;  %v1080_v29 = vcombine.low %v1061_v22, %v1077_v25  ;;  %v2340_v30 = vcombine.high %v1061_v22, %v1077_v25 }
 0x2d3   : > { %2021 = vmatprep.subr.mxu0 %v1078_v27 }
 0x2d4   : > { %2035 = vmatprep.subr.mxu1 %v1080_v29  ;;  %2022 = vmatpush3.msra.mxu0 %v1078_v27 }
 0x2d5   : > { %2036 = vmatpush3.msra.mxu1 %v1080_v29 }
 0x2f1   : > { %v688_v31 = vpop.xlane.xlu1 %687 }
 0x2f2   : > { %v706_v32 = vmax.f32 %v688_v31, 0.0 }
 0x2f4   : > { %v714_v33 = vsub.f32 %v2289_v21, %v706_v32 }
 0x2f5   : > { %v691_v34 = vpop.xlane.xlu1 %690 }
 0x2f6   : > { %v724_v35 = vmul.f32 1.442695, %v714_v33  ;;  %v707_v36 = vmax.f32 %v691_v34, 0.0 }
 0x2f8   : > { %2101 = vpow2.f32 %v724_v35  ;;  %v715_v37 = vsub.f32 %v2293_v23, %v707_v36 }
 0x2f9   : > { %v694_v38 = vpop.xlane.xlu1 %693 }
 0x2fa   : > { %v726_v39 = vmul.f32 1.442695, %v715_v37  ;;  %v708_v40 = vmax.f32 %v694_v38, 0.0 }
 0x2fc   : > { %2103 = vpow2.f32 %v726_v39  ;;  %v716_v42 = vsub.f32 %v2273_v53, %v708_v40 }
 0x2fd   : > { %v700_v43 = vpop.xlane.xlu1 %699 }
 0x2fe   : > { %v728_v44 = vmul.f32 1.442695, %v716_v42  ;;  %v710_v45 = vmax.f32 %v700_v43, 0.0 }
 0x300   : > { %2105 = vpow2.f32 %v728_v44  ;;  %v718_v46 = vsub.f32 %v2278_v4, %v710_v45 }
 0x301   : > { %v697_v47 = vpop.xlane.xlu1 %696 }
 0x302   : > { %v732_v21 = vmul.f32 1.442695, %v718_v46  ;;  %v709_v48 = vmax.f32 %v697_v47, 0.0 }
 0x304   : > { %2107 = vpow2.f32 %v732_v21  ;;  %v717_v49 = vsub.f32 %v2282_v9, %v709_v48 }
 0x305   : > { %v2347_v50 = vpop.eup %2101  ;;  %v703_v23 = vpop.xlane.xlu1 %702 }
 0x306   : > { %v730_v52 = vmul.f32 1.442695, %v717_v49  ;;  %v711_v54 = vmax.f32 %v703_v23, 0.0  ;;  %v742_v53 = vsel %vm365_vm1, %v2347_v50, 0.0 }
 0x307   : > { %743 = vadd.xlane.f32.xlu0 %v742_v53 }
 0x308   : > { %2109 = vpow2.f32 %v730_v52  ;;  %v719_v55 = vsub.f32 %v2286_v13, %v711_v54 }
 0x309   : > { %v2352_v56 = vpop.eup %2103  ;;  %v793_v2 = vpop.permute.xlu1 %792 }
 0x30a   : > { %v734_v4 = vmul.f32 1.442695, %v719_v55  ;;  %v745_v57 = vsel %vm365_vm1, %v2352_v56, 0.0 }
 0x30b   : > { %746 = vadd.xlane.f32.xlu1 %v745_v57 }
 0x30c   : > { %2111 = vpow2.f32 %v734_v4 }
 0x30d   : > { %v2106_v9 = vpop.eup %2105 }
 0x30e   : > { %v748_v58 = vsel %vm365_vm1, %v2106_v9, 0.0 }
 0x30f   : > { %749 = vadd.xlane.f32.xlu0 %v748_v58 }
 0x311   : > { %v2357_v10 = vpop.eup %2107 }
 0x312   : > { %v754_v59 = vsel %vm365_vm1, %v2357_v10, 0.0 }
 0x313   : > { %755 = vadd.xlane.f32.xlu1 %v754_v59 }
 0x315   : > { %v2361_v60 = vpop.eup %2109 }
 0x316   : > { %v751_v13 = vsel %vm365_vm1, %v2361_v60, 0.0 }
 0x317   : > { %752 = vadd.xlane.f32.xlu0 %v751_v13 }
 0x319   : > { %v2365_v61 = vpop.eup %2111 }
 0x31a   : > { %v757_v16 = vsel %vm365_vm1, %v2365_v61, 0.0 }
 0x31b   : > { %758 = vadd.xlane.f32.xlu1 %v757_v16 }
 0x32c   : > { %804 = vrot.lane.b32.xlu1 %v2259_v11, %s2161_s30 }
 0x32d   : > { %798 = vrot.lane.b32.xlu0 %v2259_v11, %s2160_s29 }
 0x357   : > { %v738_v62 = vpop.xlane.xlu0 %737 }
 0x358   : > { %vm760_vm4 = vcmp.gt.f32.partialorder %v738_v62, 0.0 }
 0x359   : > { %v768_v63 = vsel %vm760_vm4, %v738_v62, 1.0 }
 0x35a   : > { %2113 = vrcp.f32 %v768_v63 }
 0x35b   : > { %v741_v5 = vpop.xlane.xlu1 %740 }
 0x35c   : > { %vm761_vm6 = vcmp.gt.f32.partialorder %v741_v5, 0.0 }
 0x35d   : > { %v769_v19 = vsel %vm761_vm6, %v741_v5, 1.0 }
 0x367   : > { %v2114_v0 = vpop.eup %2113 }
 0x368   : > { %v784_v1 = vmul.f32 %v2114_v0, %v2326_v8 }
 0x36a   : > { %2025 = vmatprep.mubr.msk.f32.mxu0 %vm365_vm1, %v784_v1 }
 0x390   : > { %v744_v3 = vpop.xlane.xlu0 %743 }
 0x391   : > { %vm762_vm7 = vcmp.gt.f32.partialorder %v744_v3, 0.0 }
 0x392   : > { %v770_v20 = vsel %vm762_vm7, %v744_v3, 1.0 }
 0x394   : > { %v747_v12 = vpop.xlane.xlu1 %746 }
 0x395   : > { %vm763_vm9 = vcmp.gt.f32.partialorder %v747_v12, 0.0 }
 0x396   : > { %v771_v33 = vsel %vm763_vm9, %v747_v12, 1.0 }
 0x398   : > { %v750_v6 = vpop.xlane.xlu0 %749 }
 0x399   : > { %vm764_vm5 = vcmp.gt.f32.partialorder %v750_v6, 0.0 }
 0x39a   : > { %v772_v7 = vsel %vm764_vm5, %v750_v6, 1.0 }
 0x39b   : > { %2115 = vrcp.f32 %v772_v7 }
 0x39c   : > { %v756_v14 = vpop.xlane.xlu1 %755  ;;  %2117 = vrcp.f32 %v769_v19 }
 0x39d   : > { %vm766_vm10 = vcmp.gt.f32.partialorder %v756_v14, 0.0  ;;  %2119 = vrcp.f32 %v770_v20 }
 0x3a0   : > { %v753_v15 = vpop.xlane.xlu0 %752 }
 0x3a1   : > { %vm765_vm8 = vcmp.gt.f32.partialorder %v753_v15, 0.0 }
 0x3a2   : > { %v773_v27 = vsel %vm765_vm8, %v753_v15, 1.0 }
 0x3a3   : > { %2121 = vrcp.f32 %v773_v27 }
 0x3a4   : > { %v799_v17 = vpop.permute.xlu0 %798  ;;  %v759_v18 = vpop.xlane.xlu1 %758  ;;  %2123 = vrcp.f32 %v771_v33 }
 0x3a5   : > { %v810_v8 = vcombine.low %v2259_v11, %v799_v17  ;;  %v811_v22 = vcombine.high %v2259_v11, %v799_v17  ;;  %vm767_vm11 = vcmp.gt.f32.partialorder %v759_v18, 0.0  ;;  %v774_v11 = vsel %vm766_vm10, %v756_v14, 1.0 }
 0x3a6   : > { %v775_v43 = vsel %vm767_vm11, %v759_v18, 1.0  ;;  %2125 = vrcp.f32 %v774_v11 }
 0x3a7   : > { %v818_v34 = vrot.slane %v810_v8, %v2307_v41  ;;  %v825_v35 = vrot.slane %v811_v22, %v2307_v41  ;;  %2127 = vrcp.f32 %v775_v43 }
 0x3a8   : > { %v2116_v25 = vpop.eup %2115  ;;  %v805_v26 = vpop.permute.xlu1 %804 }
 0x3a9   : > { %v826_v29 = vcombine.low %v793_v2, %v805_v26  ;;  %v827_v31 = vcombine.high %v793_v2, %v805_v26  ;;  %v788_v32 = vmul.f32 %v2116_v25, %v2106_v9  ;;  %v2118_v4 = vpop.eup %2117 }
 0x3aa   : > { %v2120_v13 = vpop.eup %2119  ;;  %v785_v6 = vmul.f32 %v2118_v4, %v2333_v24 }
 0x3ab   : > { %v834_v36 = vrot.slane %v826_v29, %v2307_v41  ;;  %v841_v37 = vrot.slane %v827_v31, %v2307_v41  ;;  %2039 = vmatprep.mubr.msk.f32.mxu1 %vm365_vm1, %v788_v32  ;;  %v786_v14 = vmul.f32 %v2120_v13, %v2347_v50 }
 0x3ad   : > { %v842_v38 = vcombine.low %v818_v34, %v834_v36  ;;  %v843_v39 = vcombine.high %v818_v34, %v834_v36  ;;  %v858_v40 = vcombine.low %v825_v35, %v841_v37  ;;  %v859_v42 = vcombine.high %v825_v35, %v841_v37 }
 0x3af   : > { %v850_v44 = vrot.slane %v842_v38, %v2312_v51  ;;  %v857_v45 = vrot.slane %v843_v39, %v2312_v51  ;;  %v866_v46 = vrot.slane %v858_v40, %v2312_v51  ;;  %v873_v47 = vrot.slane %v859_v42, %v2312_v51 }
 0x3b0   : > { %v2122_v1 = vpop.eup %2121 }
 0x3b1   : > { %v946_v21 = vcombine.low %v850_v44, %v857_v45  ;;  %v1946_v48 = vcombine.high %v850_v44, %v857_v45  ;;  %v962_v49 = vcombine.low %v866_v46, %v873_v47  ;;  %v1947_v23 = vcombine.high %v866_v46, %v873_v47  ;;  %v2124_v5 = vpop.eup %2123 }
 0x3b2   : > { %v789_v7 = vmul.f32 %v2122_v1, %v2361_v60  ;;  %v787_v24 = vmul.f32 %v2124_v5, %v2352_v56 }
 0x3b3   : > { %v953_v52 = vrot.slane %v946_v21, %v2307_v41  ;;  %v961_v54 = vrot.slane %v1946_v48, %v2307_v41  ;;  %v969_v53 = vrot.slane %v962_v49, %v2307_v41  ;;  %v977_v55 = vrot.slane %v1947_v23, %v2307_v41  ;;  %v2126_v12 = vpop.eup %2125 }
 0x3b4   : > { %v2128_v17 = vpop.eup %2127  ;;  %v790_v60 = vmul.f32 %v2126_v12, %v2357_v10 }
 0x3b5   : > { %v978_v57 = vcombine.low %v953_v52, %v961_v54  ;;  %v994_v9 = vcombine.low %v969_v53, %v977_v55  ;;  %v979_v58 = vcombine.high %v953_v52, %v961_v54  ;;  %v995_v59 = vcombine.high %v969_v53, %v977_v55 }
 0x3b7   : > { %v986_v16 = vrot.slane %v978_v57, %v2312_v51  ;;  %v1002_v62 = vrot.slane %v994_v9, %v2312_v51  ;;  %v993_v63 = vrot.slane %v979_v58, %v2312_v51  ;;  %v1009_v0 = vrot.slane %v995_v59, %v2312_v51 }
 0x3b9   : > { %v1010_v2 = vcombine.low %v986_v16, %v1002_v62  ;;  %v1012_v3 = vcombine.low %v993_v63, %v1009_v0  ;;  %v1011_v15 = vcombine.high %v986_v16, %v1002_v62  ;;  %v1013_v18 = vcombine.high %v993_v63, %v1009_v0 }
 0x3bb   : > { %2023 = vmatprep.subr.mxu0 %v1010_v2  ;;  %2037 = vmatprep.subr.mxu1 %v1012_v3 }
 0x3bc   : > { %2024 = vmatpush3.msra.mxu0 %v1010_v2  ;;  %2038 = vmatpush3.msra.mxu1 %v1012_v3 }
 0x3bd   : > { %2026 = vmatmul.mubr.msk.f32.vlgmr.msra.gmra.mxu0 %vm365_vm1, %v785_v6  ;;  %2028 = vmatprep.subr.mxu0 %v2338_v28 }
 0x3be   : > { %2040 = vmatmul.mubr.msk.f32.vlgmr.msra.gmra.mxu1 %vm365_vm1, %v789_v7  ;;  %2029 = vmatpush3.msra.mxu0 %v2338_v28  ;;  %v791_v28 = vmul.f32 %v2128_v17, %v2365_v61 }
 0x3bf   : > { %2032 = vmatprep.mubr.msk.f32.mxu0 %vm365_vm1, %v786_v14  ;;  %2030 = vmatprep.subr.mxu0 %v1011_v15 }
 0x3c0   : > { %2031 = vmatpush3.msra.mxu0 %v1011_v15 }
 0x3c1   : > { %2033 = vmatmul.mubr.msk.f32.vlgmr.msra.gmra.mxu0 %vm365_vm1, %v787_v24  ;;  %2042 = vmatprep.subr.mxu0 %v2340_v30 }
 0x3c2   : > { %2043 = vmatpush3.msra.mxu0 %v2340_v30  ;;  %2046 = vmatprep.mubr.msk.f32.mxu0 %vm365_vm1, %v790_v60 }
 0x3c3   : > { %2044 = vmatprep.subr.mxu0 %v1013_v18 }
 0x3c4   : > { %2045 = vmatpush3.msra.mxu0 %v1013_v18 }
 0x3c5   : > { %2047 = vmatmul.mubr.msk.f32.vlgmr.msra.gmra.mxu0 %vm365_vm1, %v791_v28 }
 0x47d   : > { %v2027_v50 = vpop.f32.mrf.mxu0 }
 0x47e   : > { %v2041_v19 = vpop.f32.mrf.mxu1 }
 0x47f   : > { %v1154_v56 = vpop.f32.mrf.mxu0  ;;  %v1474_v10 = vcombine.low %v2027_v50, %v2041_v19  ;;  %v1475_v8 = vcombine.high %v2027_v50, %v2041_v19 }
 0x480   : > { %v1316_v25 = vpop.f32.mrf.mxu1 }
 0x481   : > { %v2034_v20 = vpop.f32.mrf.mxu0  ;;  %v1482_v30 = vrot.slane %v1474_v10, %v2307_v41  ;;  %v1489_v31 = vrot.slane %v1475_v8, %v2307_v41  ;;  %v1406_v32 = vcombine.low %v1154_v56, %v1316_v25  ;;  %v1407_v61 = vcombine.high %v1154_v56, %v1316_v25 }
 0x483   : > { %v1235_v22 = vpop.f32.mrf.mxu0  ;;  %v1414_v42 = vrot.slane %v1406_v32, %v2307_v41  ;;  %v1421_v43 = vrot.slane %v1407_v61, %v2307_v41 }
 0x485   : > { %v2048_v26 = vpop.f32.mrf.mxu0 }
 0x486   : > { %v1490_v27 = vcombine.low %v2034_v20, %v2048_v26  ;;  %v1491_v29 = vcombine.high %v2034_v20, %v2048_v26 }
 0x487   : > { %v1397_v33 = vpop.f32.mrf.mxu0 }
 0x488   : > { %v1498_v34 = vrot.slane %v1490_v27, %v2307_v41  ;;  %v1505_v35 = vrot.slane %v1491_v29, %v2307_v41  ;;  %v1422_v36 = vcombine.low %v1235_v22, %v1397_v33  ;;  %v1423_v37 = vcombine.high %v1235_v22, %v1397_v33 }
 0x48a   : > { %v1506_v11 = vcombine.low %v1482_v30, %v1498_v34  ;;  %v1507_v38 = vcombine.high %v1482_v30, %v1498_v34  ;;  %v1522_v39 = vcombine.low %v1489_v31, %v1505_v35  ;;  %v1523_v40 = vcombine.high %v1489_v31, %v1505_v35 }
 0x48b   : > { %v1430_v44 = vrot.slane %v1422_v36, %v2307_v41  ;;  %v1437_v45 = vrot.slane %v1423_v37, %v2307_v41 }
 0x48c   : > { %v1514_v46 = vrot.slane %v1506_v11, %v2312_v51  ;;  %v1521_v47 = vrot.slane %v1507_v38, %v2312_v51  ;;  %v1530_v21 = vrot.slane %v1522_v39, %v2312_v51  ;;  %v1537_v48 = vrot.slane %v1523_v40, %v2312_v51  ;;  %v1962_v38 = vld [vmem:[%s344_s28] ss:$0 sm:$0xff] }
 0x48d   : > { %v1438_v49 = vcombine.low %v1414_v42, %v1430_v44  ;;  %v1439_v23 = vcombine.high %v1414_v42, %v1430_v44  ;;  %v1454_v52 = vcombine.low %v1421_v43, %v1437_v45  ;;  %v1455_v54 = vcombine.high %v1421_v43, %v1437_v45 }
 0x48e   : > { %v1610_v53 = vcombine.low %v1514_v46, %v1521_v47  ;;  %v1960_v55 = vcombine.high %v1514_v46, %v1521_v47  ;;  %v1626_v4 = vcombine.low %v1530_v21, %v1537_v48  ;;  %v1961_v57 = vcombine.high %v1530_v21, %v1537_v48 }
 0x48f   : > { %v1446_v9 = vrot.slane %v1438_v49, %v2312_v51  ;;  %v1453_v58 = vrot.slane %v1439_v23, %v2312_v51  ;;  %v1462_v59 = vrot.slane %v1454_v52, %v2312_v51  ;;  %v1469_v13 = vrot.slane %v1455_v54, %v2312_v51 }
 0x490   : > { %v1617_v16 = vrot.slane %v1610_v53, %v2307_v41  ;;  %v1625_v62 = vrot.slane %v1960_v55, %v2307_v41  ;;  %v1633_v63 = vrot.slane %v1626_v4, %v2307_v41  ;;  %v1641_v0 = vrot.slane %v1961_v57, %v2307_v41  ;;  %v1734_v53 = vld [vmem:[%s1732_s18 + $0x8] sm:$0xff] }
 0x491   : > { %v1542_v1 = vcombine.low %v1446_v9, %v1453_v58  ;;  %v1958_v2 = vcombine.high %v1446_v9, %v1453_v58  ;;  %v1558_v3 = vcombine.low %v1462_v59, %v1469_v13  ;;  %v1959_v5 = vcombine.high %v1462_v59, %v1469_v13  ;;  %v1733_v58 = vld [vmem:[%s1732_s18] sm:$0xff] }
 0x492   : > { %v1642_v6 = vcombine.low %v1617_v16, %v1625_v62  ;;  %v1658_v7 = vcombine.low %v1633_v63, %v1641_v0  ;;  %v1643_v12 = vcombine.high %v1617_v16, %v1625_v62  ;;  %v1659_v14 = vcombine.high %v1633_v63, %v1641_v0 }
 0x493   : > { %v1549_v15 = vrot.slane %v1542_v1, %v2307_v41  ;;  %v1557_v17 = vrot.slane %v1958_v2, %v2307_v41  ;;  %v1565_v24 = vrot.slane %v1558_v3, %v2307_v41  ;;  %v1573_v60 = vrot.slane %v1959_v5, %v2307_v41 }
 0x494   : > { %v1650_v18 = vrot.slane %v1642_v6, %v2312_v51  ;;  %v1666_v28 = vrot.slane %v1658_v7, %v2312_v51  ;;  %v1657_v8 = vrot.slane %v1643_v12, %v2312_v51  ;;  %v1673_v22 = vrot.slane %v1659_v14, %v2312_v51 }
 0x495   : > { %v1574_v50 = vcombine.low %v1549_v15, %v1557_v17  ;;  %v1590_v56 = vcombine.low %v1565_v24, %v1573_v60  ;;  %v1575_v19 = vcombine.high %v1549_v15, %v1557_v17  ;;  %v1591_v20 = vcombine.high %v1565_v24, %v1573_v60 }
 0x496   : > { %v1675_v10 = vcombine.high %v1650_v18, %v1666_v28  ;;  %v1674_v25 = vcombine.low %v1650_v18, %v1666_v28  ;;  %v1676_v32 = vcombine.low %v1657_v8, %v1673_v22  ;;  %v1677_v33 = vcombine.high %v1657_v8, %v1673_v22 }
 0x497   : > { %v1582_v26 = vrot.slane %v1574_v50, %v2312_v51  ;;  %v1598_v27 = vrot.slane %v1590_v56, %v2312_v51  ;;  %v1589_v29 = vrot.slane %v1575_v19, %v2312_v51  ;;  %v1605_v30 = vrot.slane %v1591_v20, %v2312_v51 }
 0x498   : > { %1682 = vrot.lane.b32.xlu1 %v1675_v10, %s2165_s12 }
 0x499   : > { %v1607_v41 = vcombine.high %v1582_v26, %v1598_v27  ;;  %v1606_v31 = vcombine.low %v1582_v26, %v1598_v27  ;;  %v1608_v61 = vcombine.low %v1589_v29, %v1605_v30  ;;  %v1609_v34 = vcombine.high %v1589_v29, %v1605_v30 }
 0x49b   : > { %1680 = vrot.lane.b32.xlu0 %v1607_v41, %s2165_s12 }
 0x49c   : > { %1690 = vrot.lane.b32.xlu1 %v1676_v32, %s2166_s13 }
 0x49f   : > { %1688 = vrot.lane.b32.xlu0 %v1608_v61, %s2166_s13 }
 0x4a0   : > { %1698 = vrot.lane.b32.xlu1 %v1677_v33, %s2167_s14 }
 0x4a3   : > { %1696 = vrot.lane.b32.xlu0 %v1609_v34, %s2167_s14 }
 0x50a   : > { %v1683_v35 = vpop.permute.xlu1 %1682 }
 0x50b   : > { %v1704_v51 = vsel %vm1702_vm12, %v1674_v25, %v1683_v35 }
 0x50d   : > { %v1681_v36 = vpop.permute.xlu0 %1680 }
 0x50e   : > { %v1691_v37 = vpop.permute.xlu1 %1690  ;;  %v1703_v43 = vsel %vm1702_vm12, %v1606_v31, %v1681_v36 }
 0x50f   : > { %v1706_v39 = vsel %vm365_vm1, %v1704_v51, %v1691_v37 }
 0x511   : > { %v1689_v11 = vpop.permute.xlu0 %1688 }
 0x512   : > { %v1699_v40 = vpop.permute.xlu1 %1698  ;;  %v1705_v45 = vsel %vm365_vm1, %v1703_v43, %v1689_v11 }
 0x513   : > { %v1709_v42 = vsel %vm1707_vm13, %v1706_v39, %v1699_v40 }
 0x514   : > { %v1717_v44 = vadd.f32 %v1962_v38, %v1709_v42 }
 0x515   : > { %v1697_v46 = vpop.permute.xlu0 %1696 }
 0x516   : > { %v1721_v47 = vmin.f32 %v1717_v44, 0.0  ;;  %v1708_v21 = vsel %vm1707_vm13, %v1705_v45, %v1697_v46  ;;  %vm1719_vm14 = vcmp.gt.f32.partialorder %v1717_v44, 0.0 }
 0x517   : > { %v1716_v48 = vadd.f32 %v1962_v38, %v1708_v21 }
 0x518   : > { %v1724_v49 = vmul.f32 1.442695, %v1721_v47 }
 0x519   : > { %v1720_v23 = vmin.f32 %v1716_v48, 0.0  ;;  %vm1718_vm15 = vcmp.gt.f32.partialorder %v1716_v48, 0.0 }
 0x51a   : > { %2129 = vpow2.f32 %v1724_v49 }
 0x51b   : > { %v1722_v52 = vmul.f32 1.442695, %v1720_v23 }
 0x51d   : > { %2131 = vpow2.f32 %v1722_v52 }
 0x527   : > { %v2130_v54 = vpop.eup %2129 }
 0x528   : > { %v1964_v55 = vadd.f32 -1.0, %v2130_v54 }
 0x52a   : > { %v2132_v4 = vpop.eup %2131  ;;  %v1729_v57 = vsel %vm1719_vm14, %v1717_v44, %v1964_v55 }
 0x52b   : > { %v1736_v9 = vadd.f32 %v1734_v53, %v1729_v57  ;;  %v1963_v59 = vadd.f32 -1.0, %v2132_v4 }
 0x52c   : > { %1742 = sbr.rel (%p1966_p10) target bundleno = 1538 (0x602), region = 56 }
 0x52d   : > { %1738 = vst.msk [vmem:[%s1732_s18 + $0x8] sm:$0xff] %vm479_vm3, %v1736_v9  ;;  %v1728_v13 = vsel %vm1718_vm15, %v1716_v48, %v1963_v59 }
 0x52e   : > { %v1735_v16 = vadd.f32 %v1733_v58, %v1728_v13 }
 0x530   : > { %1737 = vst.msk [vmem:[%s1732_s18] sm:$0xff] %vm479_vm3, %v1735_v16 }
 0x531   : > { %v1752_v62 = vld [vmem:[%s2489_s6 + $0x18] sm:$0xff]  ;;  %v2168_v63 = vmov 0.0   ;;  %v1751_v0 = vld [vmem:[%s2489_s6 + $0x10] sm:$0xff]  ;;  %v1750_v2 = vld [vmem:[%s2489_s6 + $0x8] sm:$0xff]  ;;  %vm2169_vm0 = vmmov 0   ;;  %vm1849_vm1 = vcmask 15360  }
 0x532   : > { %2066 = vmatprep.subr.mxu1 %v2168_v63  ;;  %2049 = vmatprep.subr.mxu0 %v2168_v63  ;;  %v1749_v5 = vld [vmem:[%s2489_s6] sm:$0xff] }
 0x533   : > { %2070 = vmatpush3.msra.mxu1 %v1752_v62  ;;  %2050 = vmatpush3.msra.mxu0 %v1752_v62  ;;  %v1967_v14 = vld [vmem:[%s2490_s7] ss:$0 sm:$0xff] }
 0x534   : > { %2067 = vmatprep.subr.mxu1 %v2168_v63  ;;  %2051 = vmatprep.subr.mxu0 %v2168_v63 }
 0x535   : > { %2071 = vmatpush3.msra.mxu1 %v1751_v0  ;;  %2052 = vmatpush3.msra.mxu0 %v1751_v0 }
 0x536   : > { %2068 = vmatprep.subr.mxu1 %v2168_v63  ;;  %2053 = vmatprep.subr.mxu0 %v2168_v63 }
 0x537   : > { %v1744_v1 = vld [vmem:[#allocation2 + $0x8] sm:$0xff]  ;;  %v1743_v3 = vld [vmem:[#allocation2] sm:$0xff]  ;;  %2072 = vmatpush3.msra.mxu1 %v1750_v2  ;;  %2054 = vmatpush3.msra.mxu0 %v1750_v2  ;;  %v1748_v12 = vld [vmem:[#allocation2 + $0x10] sm:$0xff] }
 0x538   : > { %v1746_v6 = vmul.f32 0.5, %v1744_v1  ;;  %2069 = vmatprep.subr.mxu1 %v2168_v63  ;;  %2060 = vmatprep.mubr.msk.f32.mxu1 %vm2169_vm0, %v2168_v63  ;;  %v1745_v7 = vmul.f32 0.5, %v1743_v3 }
 0x539   : > { %2073 = vmatpush3.msra.mxu1 %v1749_v5  ;;  %2055 = vmatprep.subr.mxu0 %v2168_v63 }
 0x53a   : > { %2061 = vmatmul.mubr.msk.f32.vlgmr.msra.gmra.mxu1 %vm479_vm3, %v1746_v6  ;;  %2056 = vmatpush3.msra.mxu0 %v1749_v5 }
 0x53b   : > { %2057 = vmatprep.mubr.msk.f32.mxu0 %vm2169_vm0, %v2168_v63  ;;  %2063 = vmatprep.mubr.msk.f32.mxu1 %vm2169_vm0, %v2168_v63 }
 0x53c   : > { %2058 = vmatmul.mubr.msk.f32.vlgmr.msra.gmra.mxu0 %vm479_vm3, %v1745_v7 }
 0x53e   : > { %2064 = vmatmul.mubr.msk.f32.gmra.mxu1 %vm479_vm3, %v1748_v12 }
 0x5fa   : > { %v1840_v15 = vpop.f32.mrf.mxu1 }
 0x5fb   : > { %v1841_v17 = vadd.f32 %v1967_v14, %v1840_v15 }
 0x5fc   : > { %v1835_v24 = vpop.f32.mrf.mxu0  ;;  %v2062_v60 = vpop.f32.mrf.mxu1 }
 0x5fd   : > { %1851 = vst.msk [vmem:[%s2491_s8 + $0x8] sm:$0xff] %vm1849_vm1, %v1841_v17  ;;  %v1836_v18 = vadd.f32 %v1967_v14, %v1835_v24 }
 0x5fe   : > { %v2059_v28 = vpop.f32.mrf.mxu0  ;;  %v1845_v50 = vpop.f32.mrf.mxu1 }
 0x5ff   : > { %1850 = vst.msk [vmem:[%s2491_s8] sm:$0xff] %vm1849_vm1, %v1836_v18  ;;  %v1846_v56 = vadd.f32 %v1967_v14, %v1845_v50 }
 0x600   : > { %v2065_v19 = vpop.f32.mrf.mxu1 }
 0x601   : > { %1852 = vst.msk [vmem:[%s2491_s8 + $0x10] sm:$0xff] %vm1849_vm1, %v1846_v56 }
 0x602 PF: > { %s24_s10 = sadd.s32 1, %s2153_s10  }
 0x603   : > { %p21_p11 = scmp.ge.s32.totalorder %s24_s10, 5  }
 0x605   :  { %23 = sbr.rel (!%p21_p11) target bundleno = 16 (0x10), region = 96 }

</bundles_post_ra>
